<compile_context>
chip_gen: v5e
topology: v5e:2x2
jax: 0.10.0
libtpu: 0.0.40
codegen_flags: <defaults>
</compile_context>

<pallas_src>
import math
import functools

import jax
import jax.numpy as jnp
from jax.experimental import pallas as pl
from jax.experimental.pallas import tpu as pltpu


def _gelu_exact(x):
    # Matches torch.nn.GELU() default (erf-based, not tanh approximation). Keep in f32.
    return 0.5 * x * (1.0 + jax.lax.erf(x * (1.0 / math.sqrt(2.0))))


def _round_up(x, m):
    return (x + m - 1) // m * m


def mlp_kernel(x_ref, w1_ref, b1_ref, w2_ref, b2_ref, o_ref, acc_ref):
    # Grid: (M_pad // tm, H // th).  Per step:
    #   x_ref : (tm, C)  row tile (compute dtype, e.g. bf16)
    #   w1_ref: (C, th)  W1 column tile
    #   b1_ref: (1, th)  f32 bias slice for this hidden tile
    #   w2_ref: (th, C)  W2 row tile
    #   b2_ref: (1, C)   f32 output bias (added once at finalize)
    #   o_ref : (tm, C)  output row tile (resident across the hidden axis)
    #   acc_ref: (tm, C) f32 accumulator scratch
    h_idx = pl.program_id(1)

    @pl.when(h_idx == 0)
    def _():
        acc_ref[...] = jnp.zeros_like(acc_ref)

    # c_fc matmul on the MXU (bf16 x bf16 -> f32 accumulate), bias + exact GELU in f32.
    hid = jnp.dot(x_ref[...], w1_ref[...], preferred_element_type=jnp.float32)
    hid = _gelu_exact(hid + b1_ref[...])

    # c_proj partial matmul; cast the GELU output to the weight dtype only for the MXU operand.
    acc_ref[...] += jnp.dot(hid.astype(w2_ref.dtype), w2_ref[...],
                            preferred_element_type=jnp.float32)

    @pl.when(h_idx == pl.num_programs(1) - 1)
    def _():
        o_ref[...] = (acc_ref[...] + b2_ref[...]).astype(o_ref.dtype)


def mlp_forward(x, w1, b1, w2, b2, *, tm=256, th=512,
                compute_dtype=jnp.bfloat16, out_dtype=None):
    """GPT MLP forward.  x: (B, T, C); w1: (C, H); b1: (H,); w2: (H, C); b2: (C,)."""
    B, T, C = x.shape
    H = w1.shape[1]
    M = B * T
    out_dtype = out_dtype or x.dtype

    # Row tile: large enough to fill the MXU M-dimension, clamped for tiny inputs; pad M up to it.
    tm = min(tm, _round_up(M, 8))
    M_pad = _round_up(M, tm)

    # Hidden tile: must divide H; keep it a multiple of 128 (or the full H) for lane alignment.
    th = min(th, H)
    if H % th != 0:
        th = H  # fallback for odd hidden sizes: keep the whole hidden dim in one tile

    xm = x.reshape(M, C).astype(compute_dtype)
    if M_pad != M:
        xm = jnp.pad(xm, ((0, M_pad - M), (0, 0)))

    w1c = w1.astype(compute_dtype)
    w2c = w2.astype(compute_dtype)
    b1_2d = b1.reshape(1, H).astype(jnp.float32)
    b2_2d = b2.reshape(1, C).astype(jnp.float32)

    grid = (M_pad // tm, H // th)

    # VMEM budget: double-buffered x / W1 / W2 / out tiles + f32 accumulator, with headroom.
    csz = jnp.dtype(compute_dtype).itemsize
    vmem_est = (2 * tm * C * csz                # x tiles
                + 2 * (C * th + th * C) * csz   # W1 / W2 tiles
                + 2 * (th + C) * 4              # bias tiles
                + 2 * tm * C * csz              # output tiles
                + tm * C * 4)                   # accumulator
    vmem_limit = int(min(max(2 * vmem_est, 32 * 1024 * 1024), 100 * 1024 * 1024))

    cost = pl.CostEstimate(
        flops=4 * M_pad * C * H,                    # two matmuls, 2*M*C*H each
        transcendentals=M_pad * H,                  # erf in the GELU
        bytes_accessed=(2 * M_pad * C * csz         # read x + write out
                        + 2 * C * H * csz           # one pass over W1 + W2
                        + (H + C) * 4))             # biases

    out = pl.pallas_call(
        mlp_kernel,
        out_shape=jax.ShapeDtypeStruct((M_pad, C), out_dtype),
        grid_spec=pltpu.PrefetchScalarGridSpec(
            num_scalar_prefetch=0,
            grid=grid,
            in_specs=[
                pl.BlockSpec((tm, C), lambda i, h: (i, 0)),   # x rows
                pl.BlockSpec((C, th), lambda i, h: (0, h)),   # W1 column tile (streamed over H)
                pl.BlockSpec((1, th), lambda i, h: (0, h)),   # b1 slice
                pl.BlockSpec((th, C), lambda i, h: (h, 0)),   # W2 row tile (streamed over H)
                pl.BlockSpec((1, C), lambda i, h: (0, 0)),    # b2
            ],
            out_specs=pl.BlockSpec((tm, C), lambda i, h: (i, 0)),
            scratch_shapes=[pltpu.VMEM((tm, C), jnp.float32)],
        ),
        compiler_params=pltpu.CompilerParams(
            dimension_semantics=("parallel", "arbitrary"),
            vmem_limit_bytes=vmem_limit),
        cost_estimate=cost,
    )(xm, w1c, b1_2d, w2c, b2_2d)

    return out[:M].reshape(B, T, C)


def mlp_reference(x, w1, b1, w2, b2, compute_dtype=jnp.float32):
    """Pure-JAX reference with the same (optional) bf16-operand / f32-accumulate policy."""
    B, T, C = x.shape
    xc = x.reshape(-1, C).astype(compute_dtype)
    h = jnp.dot(xc, w1.astype(compute_dtype),
                preferred_element_type=jnp.float32) + b1.astype(jnp.float32)
    h = _gelu_exact(h)
    out = jnp.dot(h.astype(compute_dtype), w2.astype(compute_dtype),
                  preferred_element_type=jnp.float32) + b2.astype(jnp.float32)
    return out.reshape(B, T, C).astype(x.dtype)


if __name__ == "__main__":
    # Small config: batch=2, seq=8, n_embd=32 -> hidden=128, bias=True, dropout=0.0
    B, T, C = 2, 8, 32
    H = 4 * C

    key = jax.random.PRNGKey(0)
    kx, k1, k2, k3, k4 = jax.random.split(key, 5)

    x = jax.random.normal(kx, (B, T, C), dtype=jnp.float32)
    # Deterministic parameter init (uniform like nn.Linear, seeded).
    bound1 = 1.0 / math.sqrt(C)
    bound2 = 1.0 / math.sqrt(H)
    w1 = jax.random.uniform(k1, (C, H), minval=-bound1, maxval=bound1, dtype=jnp.float32)
    b1 = jax.random.uniform(k2, (H,), minval=-bound1, maxval=bound1, dtype=jnp.float32)
    w2 = jax.random.uniform(k3, (H, C), minval=-bound2, maxval=bound2, dtype=jnp.float32)
    b2 = jax.random.uniform(k4, (C,), minval=-bound2, maxval=bound2, dtype=jnp.float32)

    fwd = jax.jit(functools.partial(mlp_forward, tm=256, th=512))
    y = fwd(x, w1, b1, w2, b2)
    jax.block_until_ready(y)
    assert y.shape == (B, T, C)

    # Check against a reference using the same bf16-operand / f32-accumulate policy (tight tol),
    # and against the pure-f32 reference (loose tol, accounting for bf16 matmul operands).
    y_ref_bf16 = mlp_reference(x, w1, b1, w2, b2, compute_dtype=jnp.bfloat16)
    y_ref_f32 = mlp_reference(x, w1, b1, w2, b2, compute_dtype=jnp.float32)
    assert jnp.allclose(y, y_ref_bf16, atol=5e-3, rtol=5e-3), "mismatch vs bf16-matched reference"
    assert jnp.allclose(y, y_ref_f32, atol=5e-2, rtol=5e-2), "mismatch vs f32 reference"

    print("KERNEL_OK")
</pallas_src>

<mosaic_0001>
module attributes {stable_mosaic.version = 11 : i64} {
  func.func @mlp_kernel(%arg0: i32, %arg1: i32, %arg2: memref<16x32xbf16, #tpu.memory_space<vmem>>, %arg3: memref<32x128xbf16, #tpu.memory_space<vmem>>, %arg4: memref<1x128xf32, #tpu.memory_space<vmem>>, %arg5: memref<128x32xbf16, #tpu.memory_space<vmem>>, %arg6: memref<1x32xf32, #tpu.memory_space<vmem>>, %arg7: memref<16x32xf32, #tpu.memory_space<vmem>>, %arg8: memref<16x32xf32, #tpu.memory_space<vmem>>) attributes {dimension_semantics = [#tpu.dimension_semantics<parallel>, #tpu.dimension_semantics<arbitrary>], iteration_bounds = array<i64: 1, 1>, scalar_prefetch = 0 : i64, scratch_operands = 1 : i64, tpu.core_type = #tpu.core_type<tc>, window_params = [{transform_indices = @transform_0, window_bounds = array<i64: 16, 32>}, {transform_indices = @transform_1, window_bounds = array<i64: 32, 128>}, {transform_indices = @transform_2, window_bounds = array<i64: 1, 128>}, {transform_indices = @transform_3, window_bounds = array<i64: 128, 32>}, {pipeline_mode = #tpu.pipeline_mode<synchronous>, transform_indices = @transform_4, window_bounds = array<i64: 1, 32>}, {transform_indices = @transform_5, window_bounds = array<i64: 16, 32>}]} {
    %c0_i32 = arith.constant 0 : i32
    %0 = arith.cmpi eq, %arg1, %c0_i32 : i32
    %1 = arith.extui %0 : i1 to i32
    %c0_i32_0 = arith.constant 0 : i32
    %2 = arith.cmpi ne, %1, %c0_i32_0 : i32
    scf.if %2 {
      %cst_18 = arith.constant 0.000000e+00 : f32
      %26 = vector.broadcast %cst_18 : f32 to vector<16x32xf32>
      %c0_19 = arith.constant 0 : index
      %c0_20 = arith.constant 0 : index
      %27 = vector.load %arg8[%c0_19, %c0_20] : memref<16x32xf32, #tpu.memory_space<vmem>>, vector<16x32xf32>
      tpu.vector_store %arg8[%c0_19, %c0_20], %26 {strides = array<i32>} : memref<16x32xf32, #tpu.memory_space<vmem>>, vector<16x32xf32>,
    } else {
    }
    %c0 = arith.constant 0 : index
    %c0_1 = arith.constant 0 : index
    %3 = vector.load %arg2[%c0, %c0_1] : memref<16x32xbf16, #tpu.memory_space<vmem>>, vector<16x32xbf16>
    %c0_2 = arith.constant 0 : index
    %c0_3 = arith.constant 0 : index
    %4 = vector.load %arg3[%c0_2, %c0_3] : memref<32x128xbf16, #tpu.memory_space<vmem>>, vector<32x128xbf16>
    %cst = arith.constant dense<0.000000e+00> : vector<16x128xf32>
    %5 = tpu.matmul %3, %4, %cst {dimension_numbers = #tpu.dot_dimension_numbers<[1], [0], [0], [1], [0, 0, 1, 1], [], []>} : vector<16x32xbf16>, vector<32x128xbf16>, vector<16x128xf32> -> vector<16x128xf32>
    %c0_4 = arith.constant 0 : index
    %c0_5 = arith.constant 0 : index
    %6 = vector.load %arg4[%c0_4, %c0_5] : memref<1x128xf32, #tpu.memory_space<vmem>>, vector<1x128xf32>
    %7 = vector.broadcast %6 : vector<1x128xf32> to vector<16x128xf32>
    %8 = arith.addf %5, %7 : vector<16x128xf32>
    %cst_6 = arith.constant 5.000000e-01 : f32
    %9 = vector.broadcast %cst_6 : f32 to vector<16x128xf32>
    %10 = arith.mulf %9, %8 : vector<16x128xf32>
    %cst_7 = arith.constant 0.707106769 : f32
    %11 = vector.broadcast %cst_7 : f32 to vector<16x128xf32>
    %12 = arith.mulf %8, %11 : vector<16x128xf32>
    %13 = math.erf %12 : vector<16x128xf32>
    %cst_8 = arith.constant 1.000000e+00 : f32
    %14 = vector.broadcast %cst_8 : f32 to vector<16x128xf32>
    %15 = arith.addf %14, %13 : vector<16x128xf32>
    %16 = arith.mulf %10, %15 : vector<16x128xf32>
    %c0_9 = arith.constant 0 : index
    %c0_10 = arith.constant 0 : index
    %17 = vector.load %arg8[%c0_9, %c0_10] : memref<16x32xf32, #tpu.memory_space<vmem>>, vector<16x32xf32>
    %18 = arith.truncf %16 : vector<16x128xf32> to vector<16x128xbf16>
    %c0_11 = arith.constant 0 : index
    %c0_12 = arith.constant 0 : index
    %19 = vector.load %arg5[%c0_11, %c0_12] : memref<128x32xbf16, #tpu.memory_space<vmem>>, vector<128x32xbf16>
    %cst_13 = arith.constant dense<0.000000e+00> : vector<16x32xf32>
    %20 = tpu.matmul %18, %19, %cst_13 {dimension_numbers = #tpu.dot_dimension_numbers<[1], [0], [0], [1], [0, 0, 1, 1], [], []>} : vector<16x128xbf16>, vector<128x32xbf16>, vector<16x32xf32> -> vector<16x32xf32>
    %21 = arith.addf %17, %20 : vector<16x32xf32>
    %c0_14 = arith.constant 0 : index
    %c0_15 = arith.constant 0 : index
    %22 = vector.load %arg8[%c0_14, %c0_15] : memref<16x32xf32, #tpu.memory_space<vmem>>, vector<16x32xf32>
    tpu.vector_store %arg8[%c0_14, %c0_15], %21 {strides = array<i32>} : memref<16x32xf32, #tpu.memory_space<vmem>>, vector<16x32xf32>,
    %c0_i32_16 = arith.constant 0 : i32
    %23 = arith.cmpi eq, %arg1, %c0_i32_16 : i32
    %24 = arith.extui %23 : i1 to i32
    %c0_i32_17 = arith.constant 0 : i32
    %25 = arith.cmpi ne, %24, %c0_i32_17 : i32
    scf.if %25 {
      %c0_18 = arith.constant 0 : index
      %c0_19 = arith.constant 0 : index
      %26 = vector.load %arg8[%c0_18, %c0_19] : memref<16x32xf32, #tpu.memory_space<vmem>>, vector<16x32xf32>
      %c0_20 = arith.constant 0 : index
      %c0_21 = arith.constant 0 : index
      %27 = vector.load %arg6[%c0_20, %c0_21] : memref<1x32xf32, #tpu.memory_space<vmem>>, vector<1x32xf32>
      %28 = vector.broadcast %27 : vector<1x32xf32> to vector<16x32xf32>
      %29 = arith.addf %26, %28 : vector<16x32xf32>
      %c0_22 = arith.constant 0 : index
      %c0_23 = arith.constant 0 : index
      %30 = vector.load %arg7[%c0_22, %c0_23] : memref<16x32xf32, #tpu.memory_space<vmem>>, vector<16x32xf32>
      tpu.vector_store %arg7[%c0_22, %c0_23], %29 {strides = array<i32>} : memref<16x32xf32, #tpu.memory_space<vmem>>, vector<16x32xf32>,
    } else {
    }
    return
  }
  func.func @transform_0(%arg0: i32, %arg1: i32) -> (i32, i32) {
    %c0_i32 = arith.constant 0 : i32
    %c0_i32_0 = arith.constant 0 : i32
    return %arg0, %c0_i32 : i32, i32
  }
  func.func @transform_1(%arg0: i32, %arg1: i32) -> (i32, i32) {
    %c0_i32 = arith.constant 0 : i32
    %c0_i32_0 = arith.constant 0 : i32
    return %c0_i32, %arg1 : i32, i32
  }
  func.func @transform_2(%arg0: i32, %arg1: i32) -> (i32, i32) {
    %c0_i32 = arith.constant 0 : i32
    %c0_i32_0 = arith.constant 0 : i32
    return %c0_i32, %arg1 : i32, i32
  }
  func.func @transform_3(%arg0: i32, %arg1: i32) -> (i32, i32) {
    %c0_i32 = arith.constant 0 : i32
    %c0_i32_0 = arith.constant 0 : i32
    return %arg1, %c0_i32 : i32, i32
  }
  func.func @transform_4(%arg0: i32, %arg1: i32) -> (i32, i32) {
    %c0_i32 = arith.constant 0 : i32
    %c0_i32_0 = arith.constant 0 : i32
    %c0_i32_1 = arith.constant 0 : i32
    return %c0_i32, %c0_i32_0 : i32, i32
  }
  func.func @transform_5(%arg0: i32, %arg1: i32) -> (i32, i32) {
    %c0_i32 = arith.constant 0 : i32
    %c0_i32_0 = arith.constant 0 : i32
    return %arg0, %c0_i32 : i32, i32
  }
}

</mosaic_0001>

<bundles_post_ra>
// kernel: mlp_forward.1
= control target key start
LH: loop header
LB: loop body
LE: loop exit
PB: predicated region body
PF: predicated region fallthrough
CT: control target
= control target key end

     0   :  { %s473_s0 = inlined_call_operand.vmem [shape: bf16[16,32], index: 0, kind: input, shape index: {}]   ;;  %s474_s1 = inlined_call_operand.vmem [shape: bf16[32,128], index: 1, kind: input, shape index: {}]   ;;  %s475_s2 = inlined_call_operand.vmem [shape: f32[1,128], index: 2, kind: input, shape index: {}]   ;;  %s476_s3 = inlined_call_operand.vmem [shape: bf16[128,32], index: 3, kind: input, shape index: {}]   ;;  %s477_s4 = inlined_call_operand.vmem [shape: f32[1,32], index: 4, kind: input, shape index: {}]   ;;  %s478_s5 = inlined_call_operand.hbm [shape: f32[16,32], index: 5, kind: output, shape index: {}]  }
   0x1   :  { %v327_v0 = vld [vmem:[%s474_s1 + $0x8] sm:$0xff] }
   0x2   :  { %10 = vsyncpa [#allocation4], 0  ;;  %66 = vmatpush.bf16.msra.mxu0 %v327_v0  ;;  %v326_v1 = vld [vmem:[%s474_s1] sm:$0xff]  ;;  %vm26_vm0 = vcmask 261120   ;;  %v335_v4 = vld [vmem:[%s476_s3 + $0x38] sm:$0xff]  ;;  %v372_v54 = vmov 0.0  }
   0x3   :  { %v325_v2 = vld [vmem:[%s473_s0] sm:$0xff]  ;;  %229 = vmatpush.bf16.msra.mxu1 %v335_v4  ;;  %v334_v8 = vld [vmem:[%s476_s3 + $0x30] sm:$0xff]  ;;  %v333_v10 = vld [vmem:[%s476_s3 + $0x28] sm:$0xff]  ;;  %27 = vst.msk [vmem:[#allocation2] sm:$0xff] %vm26_vm0, %v372_v54  ;;  %s373_s15 = smov [#allocation3]   ;;  %s266_s19 = sshll.u32 %s478_s5, 4  ;;  %s267_s19 = int_to_ptr.hbm [resolvable:$true] %s266_s19 }
   0x4   :  { %v340_v3 = vld [vmem:[%s475_s2] ss:$0 sm:$0xff]  ;;  %v331_v21 = vld [vmem:[%s476_s3 + $0x18] sm:$0xff]  ;;  %v330_v27 = vld [vmem:[%s476_s3 + $0x10] sm:$0xff]  ;;  %28 = vst.msk [vmem:[#allocation2 + $0x8] sm:$0xff] %vm26_vm0, %v372_v54  ;;  %s264_s16 = sshll.u32 %s373_s15, 4  ;;  %s265_s16 = int_to_ptr.vmem [resolvable:$true] %s264_s16 }
   0x5   :  { %v332_v15 = vld [vmem:[%s476_s3 + $0x20] sm:$0xff]  ;;  %v329_v35 = vld [vmem:[%s476_s3 + $0x8] sm:$0xff]  ;;  %s375_s20 = smov 8  }
   0x6   :  { %67 = vmatpush.bf16.msra.mxu0 %v326_v1  ;;  %v328_v42 = vld [vmem:[%s476_s3] sm:$0xff] }
   0x7   :  { %230 = vmatpush.bf16.msra.mxu1 %v334_v8 }
   0x9   :  { %290 = vmatmul.msk.bf16.vlgmr.msra.gmra.mxu0 %vm26_vm0, %v325_v2 }
   0xb   :  { %231 = vmatpush.bf16.msra.mxu1 %v333_v10 }
   0xf   :  { %232 = vmatpush.bf16.msra.mxu1 %v332_v15 }
  0x13   :  { %233 = vmatpush.bf16.msra.mxu1 %v331_v21 }
  0x17   :  { %234 = vmatpush.bf16.msra.mxu1 %v330_v27 }
  0x1b   :  { %235 = vmatpush.bf16.msra.mxu1 %v329_v35  ;;  %v162_v35 = vld [vmem:[#allocation2] sm:$0xff] }
  0x1f   :  { %236 = vmatpush.bf16.msra.mxu1 %v328_v42 }
  0x86   :  { %v69_v5 = vpop.f32.mrf.mxu0 }
  0x87   :  { %v422_v6 = vadd.f32 %v340_v3, %v69_v5 }
  0x89   :  { %v425_v7 = vmul.f32 0.70710677, %v422_v6 }
  0x8b   :  { %v78_v9 = vmul.f32 %v425_v7, %v425_v7 }
  0x8d   :  { %v79_v11 = vmin.f32 %v78_v9, 16.0 }
  0x8e   :  { %v71_v12 = vpop.f32.mrf.mxu0 }
  0x8f   :  { %v80_v13 = vmul.f32 2.1237322e-06, %v79_v11  ;;  %v435_v14 = vadd.f32 %v340_v3, %v71_v12  ;;  %v91_v16 = vmul.f32 3.8918573e-05, %v79_v11 }
  0x91   :  { %v81_v17 = vadd.f32 0.00028619796, %v80_v13  ;;  %v441_v18 = vmul.f32 0.70710677, %v435_v14  ;;  %v92_v19 = vadd.f32 0.001143296, %v91_v16 }
  0x93   :  { %v118_v20 = vmul.f32 %v441_v18, %v441_v18  ;;  %v82_v22 = vmul.f32 %v81_v17, %v79_v11  ;;  %v93_v23 = vmul.f32 %v92_v19, %v79_v11 }
  0x95   :  { %v119_v24 = vmin.f32 %v118_v20, 16.0  ;;  %v94_v25 = vadd.f32 0.014752088, %v93_v23  ;;  %v83_v29 = vadd.f32 0.0036580483, %v82_v22 }
  0x97   :  { %v120_v26 = vmul.f32 2.1237322e-06, %v119_v24  ;;  %v131_v28 = vmul.f32 3.8918573e-05, %v119_v24  ;;  %v95_v30 = vmul.f32 %v94_v25, %v79_v11  ;;  %v84_v37 = vmul.f32 %v83_v29, %v79_v11 }
  0x98   :  { %v74_v29 = vmul.f32 0.5, %v422_v6 }
  0x99   :  { %v121_v31 = vadd.f32 0.00028619796, %v120_v26  ;;  %v132_v32 = vadd.f32 0.001143296, %v131_v28  ;;  %v96_v33 = vadd.f32 0.112945676, %v95_v30 }
  0x9a   :  { %v85_v44 = vadd.f32 0.05243302, %v84_v37  ;;  %v75_v30 = vmul.f32 0.5, %v435_v14 }
  0x9b   :  { %v122_v34 = vmul.f32 %v121_v31, %v119_v24  ;;  %v133_v36 = vmul.f32 %v132_v32, %v119_v24  ;;  %v97_v38 = vmul.f32 %v96_v33, %v79_v11 }
  0x9c   :  { %v86_v50 = vmul.f32 %v85_v44, %v79_v11 }
  0x9d   :  { %v123_v39 = vadd.f32 0.0036580483, %v122_v34  ;;  %v134_v40 = vadd.f32 0.014752088, %v133_v36  ;;  %v98_v41 = vadd.f32 0.4994258, %v97_v38 }
  0x9e   :  { %v87_v55 = vadd.f32 0.18741608, %v86_v50  ;;  %v341_v38 = vld [vmem:[%s477_s4] ss:$0 sm:$0xff]  ;;  %s374_s4 = smov 128  }
  0x9f   :  { %v135_v43 = vmul.f32 %v134_v40, %v119_v24  ;;  %v99_v45 = vmul.f32 %v98_v41, %v79_v11  ;;  %v124_v46 = vmul.f32 %v123_v39, %v119_v24 }
  0xa0   :  { %v88_v60 = vmul.f32 %v87_v55, %v79_v11 }
  0xa1   :  { %v136_v47 = vadd.f32 0.112945676, %v135_v43  ;;  %v100_v48 = vadd.f32 1.0, %v99_v45  ;;  %v125_v51 = vadd.f32 0.05243302, %v124_v46 }
  0xa2   :  { %v89_v2 = vadd.f32 1.1283791, %v88_v60 }
  0xa3   :  { %v137_v49 = vmul.f32 %v136_v47, %v119_v24  ;;  %342 = vrcp.f32 %v100_v48  ;;  %v126_v56 = vmul.f32 %v125_v51, %v119_v24  ;;  %v112_v63 = vand.u32 2147483648, %v100_v48 }
  0xa4   :  { %v110_v1 = vand.u32 2147483647, %v100_v48  ;;  %vm106_vm2 = vweird.f32 %v100_v48  ;;  %v90_v12 = vmul.f32 %v89_v2, %v425_v7 }
  0xa5   :  { %v138_v52 = vadd.f32 0.4994258, %v137_v49  ;;  %v127_v61 = vadd.f32 0.18741608, %v126_v56  ;;  %v113_v8 = vor.u32 1.1754944e-38, %v112_v63 }
  0xa6   :  { %vm111_vm4 = vcmp.eq.f32.partialorder %v110_v1, 8.507059e+37 }
  0xa7   :  { %v139_v53 = vmul.f32 %v138_v52, %v119_v24  ;;  %v128_v4 = vmul.f32 %v127_v61, %v119_v24 }
  0xa9   :  { %v140_v57 = vadd.f32 1.0, %v139_v53  ;;  %v343_v58 = vpop.eup %342  ;;  %v129_v15 = vadd.f32 1.1283791, %v128_v4 }
  0xaa   :  { %v102_v59 = vmul.f32 %v343_v58, %v100_v48  ;;  %vm107_vm1 = vweird.f32 %v343_v58 }
  0xab   :  { %344 = vrcp.f32 %v140_v57  ;;  %vm108_vm3 = vmor %vm106_vm2, %vm107_vm1  ;;  %v152_v16 = vand.u32 2147483648, %v140_v57  ;;  %v150_v20 = vand.u32 2147483647, %v140_v57  ;;  %vm146_vm6 = vweird.f32 %v140_v57 }
  0xac   :  { %v103_v62 = vsub.f32 1.0, %v102_v59  ;;  %v130_v23 = vmul.f32 %v129_v15, %v441_v18  ;;  %v163_v18 = vld [vmem:[#allocation2 + $0x8] sm:$0xff] }
  0xad   :  { %v153_v22 = vor.u32 1.1754944e-38, %v152_v16  ;;  %vm151_vm8 = vcmp.eq.f32.partialorder %v150_v20, 8.507059e+37 }
  0xae   :  { %v104_v0 = vmul.f32 %v343_v58, %v103_v62 }
  0xb0   :  { %v105_v5 = vadd.f32 %v343_v58, %v104_v0 }
  0xb1   :  { %v345_v3 = vpop.eup %344 }
  0xb2   :  { %v142_v9 = vmul.f32 %v345_v3, %v140_v57  ;;  %v109_v10 = vsel %vm108_vm3, %v343_v58, %v105_v5  ;;  %vm147_vm5 = vweird.f32 %v345_v3 }
  0xb3   :  { %v114_v13 = vsel %vm111_vm4, %v113_v8, %v109_v10  ;;  %vm148_vm7 = vmor %vm146_vm6, %vm147_vm5 }
  0xb4   :  { %v143_v11 = vsub.f32 1.0, %v142_v9  ;;  %v115_v17 = vmul.f32 %v114_v13, %v90_v12 }
  0xb6   :  { %v144_v19 = vmul.f32 %v345_v3, %v143_v11  ;;  %v291_v24 = vclamps-f32 %v115_v17, 1.0 }
  0xb8   :  { %v145_v21 = vadd.f32 %v345_v3, %v144_v19  ;;  %v158_v28 = vadd.f32 1.0, %v291_v24 }
  0xba   :  { %v149_v25 = vsel %vm148_vm7, %v345_v3, %v145_v21  ;;  %v160_v32 = vmul.f32 %v158_v28, %v74_v29 }
  0xbb   :  { %v154_v26 = vsel %vm151_vm8, %v153_v22, %v149_v25 }
  0xbc   :  { %v155_v27 = vmul.f32 %v154_v26, %v130_v23 }
  0xbe   :  { %v292_v7 = vclamps-f32 %v155_v27, 1.0 }
  0xc0   :  { %v159_v31 = vadd.f32 1.0, %v292_v7 }
  0xc2   :  { %v161_v33 = vmul.f32 %v159_v31, %v75_v30 }
  0xc4   :  { %v164_v34 = vpack.c.bf16 %v161_v33, %v160_v32 }
  0xc6   :  { %237 = vmatmul.bf16.vlgmr.msra.gmra.mxu1 %v164_v34 }
 0x143   :  { %v238_v36 = vpop.f32.mrf.mxu1 }
 0x144   :  { %v243_v37 = vadd.f32 %v238_v36, %v162_v35 }
 0x146   :  { %245 = vst.msk [vmem:[#allocation2] sm:$0xff] %vm26_vm0, %v243_v37 }
 0x14b   :  { %v240_v39 = vpop.f32.mrf.mxu1 }
 0x14c   :  { %v244_v40 = vadd.f32 %v240_v39, %v163_v18 }
 0x14d   :  { %v250_v6 = vld [vmem:[#allocation2] sm:$0xff] }
 0x14e   :  { %246 = vst.msk [vmem:[#allocation2 + $0x8] sm:$0xff] %vm26_vm0, %v244_v40  ;;  %v256_v14 = vadd.f32 %v341_v38, %v250_v6 }
 0x150   :  { %258 = vst.msk [vmem:[#allocation3] sm:$0xff] %vm26_vm0, %v256_v14 }
 0x155   :  { %v251_v41 = vld [vmem:[#allocation2 + $0x8] sm:$0xff] }
 0x156   :  { %v257_v42 = vadd.f32 %v341_v38, %v251_v41 }
 0x158   :  { %259 = vst.msk [vmem:[#allocation3 + $0x8] sm:$0xff] %vm26_vm0, %v257_v42 }
 0x159   :  { %272 = dma.vmem_to_hbm [thread:$0]  %s265_s16, 256, %s267_s19, [#allocation4], %s374_s4, %s374_s4, %s375_s20  }
 0x15a   :  { %370 = dma.done.wait [#allocation4], 256  }
 0x15b   :  { %371 = vsyncadd [#allocation4], 4294967040 }
 0x15c   :  { %277 = vsyncpa [#allocation4], 1 }

</bundles_post_ra>
